<compile_context>
chip_gen: v7x
topology: tpu7x:2x2x1
jax: 0.10.0
libtpu: 0.0.40
codegen_flags: <defaults>
</compile_context>

<pallas_src>
import functools

import jax
import jax.numpy as jnp
from jax.experimental import pallas as pl
from jax.experimental.pallas import tpu as pltpu

D_HIDDEN = 100   # matches nn.Linear(d, 100)
D_PAD = 128      # hidden dim padded to a full lane width


def _mlp_probe_kernel(x_ref, w1_ref, b1_ref, w2_ref, b2_ref, o_ref, *, cast_bf16):
    x = x_ref[...]
    w1 = w1_ref[...]
    if cast_bf16:
        # In-kernel cast for the MXU: zero extra HBM bytes, f32 accumulation.
        x = x.astype(jnp.bfloat16)
        w1 = w1.astype(jnp.bfloat16)
    # Layer 1: MXU matmul with f32 accumulation; bias + ReLU on the VPU.
    h = jnp.dot(x, w1, preferred_element_type=jnp.float32)       # (tile_b, 128)
    h = jnp.maximum(h + b1_ref[...], 0.0)
    # Layer 2 (out_features = 1): (1,128) . (tile_b,128)^T on the MXU gives a
    # lane-dense (1, tile_b) row -- no 128->1 cross-lane reduction and no
    # masked single-lane stores on the output path.
    o = jax.lax.dot_general(
        w2_ref[...], h,
        dimension_numbers=(((1,), (1,)), ((), ())),
        preferred_element_type=jnp.float32)                      # (1, tile_b)
    o = o + b2_ref[0]                                            # SMEM scalar bias
    o_ref[0] = jax.nn.sigmoid(o).astype(o_ref.dtype)


def _round_up(x, m):
    return ((x + m - 1) // m) * m


def _vmem_capacity_bytes():
    try:
        return int(pltpu.get_tpu_info().vmem_capacity_bytes)
    except Exception:
        return 64 * 1024 * 1024   # conservative fallback (v7x per-TC VMEM)


def _choose_tile_b(B, d, elt):
    """Byte-based batch-tile sizing.

    Target ~4 MiB per streamed x tile (measured tiling data: 2-4 MiB tiles
    reach >=85% of HBM roofline), constrained by a generation-aware VMEM
    budget, and capped so there are >=2 grid steps whenever B permits (so the
    'parallel' axis can feed both v7x TensorCores)."""
    mult = 16 if elt == 2 else 8            # bf16 packs 16 sublanes per vreg
    vmem_cap = _vmem_capacity_bytes()
    budget = int(0.70 * vmem_cap)           # headroom for compiler scratch
    w1_bytes = d * D_PAD * elt              # resident, single-buffered
    fixed = w1_bytes + 2 * D_PAD * 4 + (2 << 20)
    avail = max(budget - fixed, 1 << 20)
    per_row_bytes = 2 * d * elt + 2 * 4     # 2x-buffered x row + 2x-buffered out lane
    vmem_rows = avail // per_row_bytes
    target_rows = (4 << 20) // (d * elt)    # ~4 MiB x tile
    tile = max(min(vmem_rows, target_rows), mult)
    if B > mult:
        # Ensure at least 2 grid steps so both v7x TensorCores get work.
        tile = min(tile, _round_up(pl.cdiv(B, 2), mult))
    tile = min(tile, _round_up(B, mult))    # never bigger than the (padded) batch
    if tile >= 128:
        tile = (tile // 128) * 128          # fully lane-dense output stores
    else:
        tile = max((tile // mult) * mult, mult)
    return int(tile)


def mlp_probe_forward(x, w1, b1, w2, b2, *, mxu_bf16=False):
    """x: (B, d); w1: (d, 100); b1: (1, 100); w2: (100, 1); b2: (1, 1)."""
    B, d = x.shape
    assert w1.shape == (d, D_HIDDEN)
    assert b1.shape == (1, D_HIDDEN)
    assert w2.shape == (D_HIDDEN, 1)
    assert b2.shape == (1, 1)

    pad_h = D_PAD - D_HIDDEN
    # Zero-pad hidden dim 100 -> 128 (padded units are exact zeros end-to-end).
    w1p = jnp.pad(w1, ((0, 0), (0, pad_h)))                    # (d, 128)
    b1p = jnp.pad(b1, ((0, 0), (0, pad_h))).astype(jnp.float32)    # (1, 128)
    w2row = jnp.pad(w2, ((0, pad_h), (0, 0))).T.astype(jnp.float32)  # (1, 128)
    b2s = b2.reshape((1,)).astype(jnp.float32)                 # SMEM scalar

    # Stream x in whatever dtype it arrives in; only match W1's dtype to it.
    if x.dtype == jnp.bfloat16:
        w1p = w1p.astype(jnp.bfloat16)
        cast_bf16 = False                    # already bf16 on the MXU
    else:
        x = x.astype(jnp.float32)
        w1p = w1p.astype(jnp.float32)
        cast_bf16 = bool(mxu_bf16)           # in-kernel bf16 cast, f32 accum
    elt = jnp.dtype(x.dtype).itemsize

    tile_b = _choose_tile_b(B, d, elt)
    num_tiles = int(pl.cdiv(B, tile_b))

    # Explicit scoped-VMEM limit with headroom (v7x-safe: <= ~0.72 * capacity).
    vmem_cap = _vmem_capacity_bytes()
    needed = (2 * tile_b * d * elt          # double-buffered x tiles
              + d * D_PAD * elt             # resident W1 (single-buffered)
              + 2 * D_PAD * 4               # b1, W2 row
              + 2 * tile_b * 4              # double-buffered output tiles
              + (2 << 20))                  # headroom
    vmem_limit = int(min(max(needed, 16 << 20), int(0.72 * vmem_cap)))

    kernel = functools.partial(_mlp_probe_kernel, cast_bf16=cast_bf16)

    out = pl.pallas_call(
        kernel,
        # Lane-dense output slab: one (1, tile_b) row per grid step; the
        # garbage rows of a partial tail tile are sliced off below.
        out_shape=jax.ShapeDtypeStruct((num_tiles, 1, tile_b), jnp.float32),
        grid=(num_tiles,),
        in_specs=[
            # x: streamed batch tile.  If profiling ever shows exposed DMA for
            # very small d, sweep pipeline_mode=pl.Buffered(3) here.
            pl.BlockSpec((tile_b, d), lambda i: (i, 0)),
            # Resident operands: constant index_map + single buffering so they
            # are not double-allocated in VMEM.
            pl.BlockSpec((d, D_PAD), lambda i: (0, 0),
                         pipeline_mode=pl.Buffered(1)),
            pl.BlockSpec((1, D_PAD), lambda i: (0, 0),
                         pipeline_mode=pl.Buffered(1)),
            pl.BlockSpec((1, D_PAD), lambda i: (0, 0),
                         pipeline_mode=pl.Buffered(1)),
            pl.BlockSpec(memory_space=pltpu.MemorySpace.SMEM),   # b2 scalar
        ],
        out_specs=pl.BlockSpec((1, 1, tile_b), lambda i: (i, 0, 0)),
        compiler_params=pltpu.CompilerParams(
            dimension_semantics=("parallel",),
            vmem_limit_bytes=vmem_limit,
        ),
    )(x, w1p, b1p, w2row, b2s)

    return out.reshape(num_tiles * tile_b)[:B].reshape(B, 1)


def _reference_forward(x, w1, b1, w2, b2):
    h = jnp.maximum(x.astype(jnp.float32) @ w1 + b1, 0.0)
    return jax.nn.sigmoid(h @ w2 + b2)


if __name__ == "__main__":
    # Small deterministic setup: batch=8, feature dim d=32.
    B, d = 8, 32
    key = jax.random.PRNGKey(0)
    kx, k1, k2, k3, k4 = jax.random.split(key, 5)

    x = jax.random.normal(kx, (B, d), dtype=jnp.float32)

    # Deterministic synthetic parameters (PyTorch-like uniform(-1/sqrt(fan_in), +)).
    bound1 = 1.0 / jnp.sqrt(jnp.float32(d))
    w1 = jax.random.uniform(k1, (d, D_HIDDEN), jnp.float32, -bound1, bound1)
    b1 = jax.random.uniform(k2, (1, D_HIDDEN), jnp.float32, -bound1, bound1)
    bound2 = 1.0 / jnp.sqrt(jnp.float32(D_HIDDEN))
    w2 = jax.random.uniform(k3, (D_HIDDEN, 1), jnp.float32, -bound2, bound2)
    b2 = jax.random.uniform(k4, (1, 1), jnp.float32, -bound2, bound2)

    # 1) f32 path, exact shapes.
    out = jax.block_until_ready(mlp_probe_forward(x, w1, b1, w2, b2))
    ref = _reference_forward(x, w1, b1, w2, b2)
    assert out.shape == (B, 1)
    assert jnp.allclose(out, ref, atol=1e-5, rtol=1e-5)

    # 2) Tail-tile path (B not a multiple of tile_b): no whole-array pad; the
    #    partial last block's garbage rows are independent and sliced off.
    B2 = 13
    x2 = jax.random.normal(jax.random.PRNGKey(7), (B2, d), dtype=jnp.float32)
    out2 = jax.block_until_ready(mlp_probe_forward(x2, w1, b1, w2, b2))
    ref2 = _reference_forward(x2, w1, b1, w2, b2)
    assert out2.shape == (B2, 1)
    assert jnp.allclose(out2, ref2, atol=1e-5, rtol=1e-5)

    # 3) In-kernel bf16 MXU cast (f32 streaming + f32 accumulation): validated
    #    against the f32 reference at looser tolerance.
    out3 = jax.block_until_ready(mlp_probe_forward(x, w1, b1, w2, b2, mxu_bf16=True))
    assert jnp.allclose(out3, ref, atol=2e-2, rtol=2e-2)

    # 4) bf16-upstream input: streamed as bf16 (half the HBM bytes), no extra
    #    wrapper-side cast pass; f32 accumulation in the kernel.
    xb = x.astype(jnp.bfloat16)
    out4 = jax.block_until_ready(mlp_probe_forward(xb, w1, b1, w2, b2))
    assert out4.shape == (B, 1)
    assert jnp.allclose(out4, ref, atol=2e-2, rtol=2e-2)

    print("KERNEL_OK")
</pallas_src>

<mosaic_0001>
module attributes {stable_mosaic.version = 11 : i64} {
  func.func @_mlp_probe_kernel(%arg0: i32, %arg1: memref<8x32xf32, #tpu.memory_space<vmem>>, %arg2: memref<32x128xf32, #tpu.memory_space<vmem>>, %arg3: memref<1x128xf32, #tpu.memory_space<vmem>>, %arg4: memref<1x128xf32, #tpu.memory_space<vmem>>, %arg5: memref<1xf32, #tpu.memory_space<smem>>, %arg6: memref<1x1x8xf32, #tpu.memory_space<vmem>>) attributes {dimension_semantics = [#tpu.dimension_semantics<parallel>], iteration_bounds = array<i64: 1>, scalar_prefetch = 0 : i64, scratch_operands = 0 : i64, tpu.core_type = #tpu.core_type<tc>, window_params = [{transform_indices = @transform_0, window_bounds = array<i64: 8, 32>}, {pipeline_mode = #tpu.pipeline_mode<synchronous>, transform_indices = @transform_1, window_bounds = array<i64: 32, 128>}, {pipeline_mode = #tpu.pipeline_mode<synchronous>, transform_indices = @transform_2, window_bounds = array<i64: 1, 128>}, {pipeline_mode = #tpu.pipeline_mode<synchronous>, transform_indices = @transform_3, window_bounds = array<i64: 1, 128>}, {transform_indices = @transform_4, window_bounds = array<i64: 1>}, {transform_indices = @transform_5, window_bounds = array<i64: 1, 1, 8>}]} {
    %c0 = arith.constant 0 : index
    %c0_0 = arith.constant 0 : index
    %0 = vector.load %arg1[%c0, %c0_0] : memref<8x32xf32, #tpu.memory_space<vmem>>, vector<8x32xf32>
    %c0_1 = arith.constant 0 : index
    %c0_2 = arith.constant 0 : index
    %1 = vector.load %arg2[%c0_1, %c0_2] : memref<32x128xf32, #tpu.memory_space<vmem>>, vector<32x128xf32>
    %cst = arith.constant dense<0.000000e+00> : vector<8x128xf32>
    %2 = tpu.matmul %0, %1, %cst {dimension_numbers = #tpu.dot_dimension_numbers<[1], [0], [0], [1], [0, 0, 1, 1], [], []>} : vector<8x32xf32>, vector<32x128xf32>, vector<8x128xf32> -> vector<8x128xf32>
    %c0_3 = arith.constant 0 : index
    %c0_4 = arith.constant 0 : index
    %3 = vector.load %arg3[%c0_3, %c0_4] : memref<1x128xf32, #tpu.memory_space<vmem>>, vector<1x128xf32>
    %4 = vector.broadcast %3 : vector<1x128xf32> to vector<8x128xf32>
    %5 = arith.addf %2, %4 : vector<8x128xf32>
    %cst_5 = arith.constant 0.000000e+00 : f32
    %6 = vector.broadcast %cst_5 : f32 to vector<8x128xf32>
    %7 = arith.maximumf %5, %6 : vector<8x128xf32>
    %c0_6 = arith.constant 0 : index
    %c0_7 = arith.constant 0 : index
    %8 = vector.load %arg4[%c0_6, %c0_7] : memref<1x128xf32, #tpu.memory_space<vmem>>, vector<1x128xf32>
    %cst_8 = arith.constant dense<0.000000e+00> : vector<1x8xf32>
    %9 = tpu.matmul %8, %7, %cst_8 {dimension_numbers = #tpu.dot_dimension_numbers<[1], [1], [0], [0], [0, 0, 1, 0], [], []>} : vector<1x128xf32>, vector<8x128xf32>, vector<1x8xf32> -> vector<1x8xf32>
    %c0_9 = arith.constant 0 : index
    %10 = memref.load %arg5[%c0_9] : memref<1xf32, #tpu.memory_space<smem>>
    %11 = vector.broadcast %10 : f32 to vector<1x8xf32>
    %12 = arith.addf %9, %11 : vector<1x8xf32>
    %13 = arith.negf %12 : vector<1x8xf32>
    %14 = math.exp %13 : vector<1x8xf32>
    %cst_10 = arith.constant 1.000000e+00 : f32
    %15 = vector.broadcast %cst_10 : f32 to vector<1x8xf32>
    %16 = arith.addf %15, %14 : vector<1x8xf32>
    %17 = arith.divf %15, %16 : vector<1x8xf32>
    %c0_11 = arith.constant 0 : index
    %c0_12 = arith.constant 0 : index
    %c0_13 = arith.constant 0 : index
    %18 = vector.load %arg6[%c0_11, %c0_12, %c0_13] : memref<1x1x8xf32, #tpu.memory_space<vmem>>, vector<1x1x8xf32>
    %19 = vector.shape_cast %18 : vector<1x1x8xf32> to vector<1x8xf32>
    %20 = vector.shape_cast %17 : vector<1x8xf32> to vector<1x1x8xf32>
    tpu.vector_store %arg6[%c0_11, %c0_12, %c0_13], %20 {strides = array<i32>} : memref<1x1x8xf32, #tpu.memory_space<vmem>>, vector<1x1x8xf32>,
    return
  }
  func.func @transform_0(%arg0: i32) -> (i32, i32) {
    %c0_i32 = arith.constant 0 : i32
    %c0_i32_0 = arith.constant 0 : i32
    return %arg0, %c0_i32 : i32, i32
  }
  func.func @transform_1(%arg0: i32) -> (i32, i32) {
    %c0_i32 = arith.constant 0 : i32
    %c0_i32_0 = arith.constant 0 : i32
    %c0_i32_1 = arith.constant 0 : i32
    return %c0_i32, %c0_i32_0 : i32, i32
  }
  func.func @transform_2(%arg0: i32) -> (i32, i32) {
    %c0_i32 = arith.constant 0 : i32
    %c0_i32_0 = arith.constant 0 : i32
    %c0_i32_1 = arith.constant 0 : i32
    return %c0_i32, %c0_i32_0 : i32, i32
  }
  func.func @transform_3(%arg0: i32) -> (i32, i32) {
    %c0_i32 = arith.constant 0 : i32
    %c0_i32_0 = arith.constant 0 : i32
    %c0_i32_1 = arith.constant 0 : i32
    return %c0_i32, %c0_i32_0 : i32, i32
  }
  func.func @transform_4(%arg0: i32) -> i32 {
    %c0_i32 = arith.constant 0 : i32
    %c0_i32_0 = arith.constant 0 : i32
    return %c0_i32 : i32
  }
  func.func @transform_5(%arg0: i32) -> (i32, i32, i32) {
    %c0_i32 = arith.constant 0 : i32
    %c0_i32_0 = arith.constant 0 : i32
    %c0_i32_1 = arith.constant 0 : i32
    return %arg0, %c0_i32, %c0_i32_0 : i32, i32, i32
  }
}

</mosaic_0001>

<bundles_post_ra>
// kernel: tpu_custom_call.1
= control target key start
LH: loop header
LB: loop body
LE: loop exit
PB: predicated region body
PF: predicated region fallthrough
CT: control target
= control target key end

     0   :  { %11 = vsyncpa [#allocation4], 0  ;;  %s438_s0 = inlined_call_operand.hbm [shape: f32[8,32], index: 0, kind: input, shape index: {}]   ;;  %s439_s1 = inlined_call_operand.hbm [shape: f32[32,128], index: 1, kind: input, shape index: {}]   ;;  %s440_s2 = inlined_call_operand.vmem [shape: f32[1,128], index: 2, kind: input, shape index: {}]   ;;  %s441_s3 = inlined_call_operand.vmem [shape: f32[1,128], index: 3, kind: input, shape index: {}]   ;;  %s442_s4 = inlined_call_operand.<no memory space> [shape: f32[1], index: 4, kind: input, shape index: {}]   ;;  %s443_s5 = inlined_call_operand.hbm [shape: f32[1,1,8], index: 5, kind: output, shape index: {}]  }
   0x1   :  { %12 = vsyncpa [#allocation7], 0 }
   0x2   :  { %13 = vsyncpa [#allocation5], 0  ;;  %s348_s18 = smov [#allocation3]   ;;  %s349_s20 = smov [#allocation6]  }
   0x3   :  { %s20_s19 = sshll.u32 %s348_s18, 4  ;;  %s29_s21 = sshll.u32 %s349_s20, 4  ;;  %s21_s19 = int_to_ptr.vmem [resolvable:$true] %s20_s19  ;;  %s386_s21 = int_to_ptr.vmem [resolvable:$true] %s29_s21 }
   0x4   :  { %s276_s24 = scalar_lea.hbm %s438_s0, 128 }
   0x5   :  { %p277_p0 = scmp.ne.s32.totalorder %s438_s0, %s276_s24  ;;  %p280_p1 = scmp.lt.u32.totalorder %s276_s24, %s438_s0 }
   0x7   :  { %p282_p2 = pnand %p280_p1, %p277_p0 }
   0x9   :  { %285 = shalt.err (!%p282_p2)
}
   0xa   :  { %s286_s29 = scalar_lea.vmem %s21_s19, 128  ;;  %p291_p4 = scmp.lt.s32.totalorder %s21_s19, %s21_s19 }
   0xb   :  { %p287_p3 = scmp.ne.s32.totalorder %s21_s19, %s286_s29  ;;  %p292_p5 = scmp.lt.s32.totalorder %s286_s29, %s286_s29 }
   0xd   :  { %p293_p6 = por %p292_p5, %p291_p4 }
   0xf   :  { %p294_p7 = pnand %p293_p6, %p287_p3 }
  0x11   :  { %297 = shalt.err (!%p294_p7)
}
  0x12   :  { %23 = dma.hbm_to_vmem [thread:$0]  %s438_s0, 128, %s21_s19, [#allocation4]  }
  0x13   :  { %s298_s9 = scalar_lea.hbm %s439_s1, 512 }
  0x14   :  { %p299_p8 = scmp.ne.s32.totalorder %s439_s1, %s298_s9  ;;  %p302_p9 = scmp.lt.u32.totalorder %s298_s9, %s439_s1 }
  0x16   :  { %p304_p10 = pnand %p302_p9, %p299_p8 }
  0x18   :  { %307 = shalt.err (!%p304_p10)
}
  0x19   :  { %s308_s14 = scalar_lea.vmem %s386_s21, 512  ;;  %p313_p12 = scmp.lt.s32.totalorder %s386_s21, %s386_s21 }
  0x1a   :  { %p309_p11 = scmp.ne.s32.totalorder %s386_s21, %s308_s14  ;;  %p314_p13 = scmp.lt.s32.totalorder %s308_s14, %s308_s14 }
  0x1c   :  { %p315_p0 = por %p314_p13, %p313_p12 }
  0x1e   :  { %p316_p1 = pnand %p315_p0, %p309_p11 }
  0x20   :  { %319 = shalt.err (!%p316_p1)
}
  0x21   :  { %s350_s0 = smov 128   ;;  %s351_s15 = smov 8  }
  0x22   :  { %35 = dma.hbm_to_vmem [thread:$0]  %s439_s1, 512, %s386_s21, [#allocation7], %s350_s0, %s350_s0, %s351_s15  }
  0x23   :  { %342 = dma.done.wait [#allocation4], 128  }
  0x24   :  { %343 = vsyncadd [#allocation4], 4294967168 }
  0x25   :  { %344 = dma.done.wait [#allocation7], 512  }
  0x26   :  { %345 = vsyncadd [#allocation7], 4294966784  ;;  %v352_v0 = vmov 0.0|0.0   ;;  %vm353_vm0 = vmmov 0   ;;  %v354_v1 = vmov 0.0   ;;  %v49_v2 = vld [vmem:[#allocation6] sm:$0xff]  ;;  %v137_v15 = vstv %s442_s4 }
  0x27   :  { %258 = vmatprep.subr.bf16.mxu0 %v352_v0  ;;  %250 = vmatprep.mubr.msk.f32.mxu0 %vm353_vm0, %v354_v1  ;;  %v50_v3 = vld [vmem:[#allocation6 + $0x8] sm:$0xff]  ;;  %v51_v4 = vld [vmem:[#allocation6 + $0x10] sm:$0xff]  ;;  %v52_v6 = vld [vmem:[#allocation6 + $0x18] sm:$0xff]  ;;  %vm60_vm1 = vcmask 261120   ;;  %vm214_vm2 = vcmask 57344  }
  0x28   :  { %253 = vmatprep.subr.mxu1 %v354_v1  ;;  %255 = vmatprep.mubr.msk.f32.mxu1 %vm353_vm0, %v354_v1  ;;  %v259_v5 = vpack.c.bf16 %v50_v3, %v49_v2  ;;  %v262_v7 = vpack.c.bf16 %v52_v6, %v51_v4  ;;  %v48_v8 = vld [vmem:[#allocation3] sm:$0xff] }
  0x29   :  { %v232_v9 = vld [vmem:[%s440_s2] ss:$0 sm:$0xff]  ;;  %s355_s2 = smov [#allocation8]  }
  0x2a   :  { %260 = vmatpush3.bf16.msra.mxu0 %v259_v5  ;;  %v135_v14 = vld [vmem:[%s441_s3] sm:$0x1]  ;;  %s222_s23 = sshll.u32 %s355_s2, 4  ;;  %s223_s23 = int_to_ptr.vmem [resolvable:$true] %s222_s23 }
  0x2b   :  { %261 = vmatprep.subr.bf16.mxu0 %v352_v0  ;;  %s320_s3 = scalar_lea.vmem %s223_s23, 16  ;;  %s324_s24 = scalar_lea.vmem %s223_s23, 32 }
  0x2c   :  { %p321_p2 = scmp.ne.s32.totalorder %s223_s23, %s320_s3  ;;  %p325_p3 = scmp.lt.s32.totalorder %s223_s23, %s223_s23 }
  0x2d   :  { %p326_p4 = scmp.lt.s32.totalorder %s324_s24, %s320_s3 }
  0x2e   :  { %263 = vmatpush3.bf16.msra.mxu0 %v262_v7 }
  0x2f   :  { %p327_p5 = por %p326_p4, %p325_p3 }
  0x31   :  { %251 = vmatmul.mubr.msk.f32.vlgmr.msra.gmra.mrb[0].mxu0 %vm60_vm1, %v48_v8  ;;  %p328_p6 = pnand %p327_p5, %p321_p2 }
 0x104   :  { %v130_v10 = vpop.f32.mrb[0].mxu0 }
 0x105   :  { %v131_v11 = vadd.f32 %v232_v9, %v130_v10  ;;  %v252_v12 = vpop.f32.mrb[1].mxu0 }
 0x107   :  { %v134_v13 = vmax.f32 %v131_v11, 0.0 }
 0x109   :  { %254 = vmatpush3.xpose.msra.mxu1 %v134_v13 }
 0x10c   :  { %256 = vmatmul.mubr.f32.vlgmr.msra.gmra.mrb[0].mxu1 %v135_v14 }
 0x1df   :  { %v204_v16 = vpop.f32.mrb[0].mxu1 }
 0x1e0   :  { %v205_v17 = vadd.f32 %v204_v16, %v137_v15  ;;  %v257_v18 = vpop.f32.mrb[1].mxu1 }
 0x1e2   :  { %v234_v19 = vmul.f32 -1.442695, %v205_v17 }
 0x1e4   :  { %272 = vpow2.f32 %v234_v19 }
 0x1ee   :  { %v273_v20 = vpop.eup %272 }
 0x1ef   :  { %v211_v21 = vadd.f32 1.0, %v273_v20 }
 0x1f1   :  { %274 = vrcp.f32 %v211_v21 }
 0x1fb   :  { %v275_v22 = vpop.eup %274 }
 0x1fc   :  { %215 = vst.msk [vmem:[#allocation8] sm:$0x1] %vm214_vm2, %v275_v22 }
 0x1fd   :  { %331 = shalt.err (!%p328_p6)
}
 0x1fe   :  { %s332_s26 = scalar_lea.hbm %s443_s5, 16 }
 0x1ff   :  { %p333_p7 = scmp.ne.s32.totalorder %s443_s5, %s332_s26  ;;  %p336_p8 = scmp.lt.u32.totalorder %s332_s26, %s443_s5 }
 0x201   :  { %p338_p9 = pnand %p336_p8, %p333_p7 }
 0x203   :  { %341 = shalt.err (!%p338_p9)
}
 0x204   :  { %225 = dma.vmem_to_hbm [thread:$0]  %s223_s23, 16, %s443_s5, [#allocation5]  }
 0x205   :  { %346 = dma.done.wait [#allocation5], 16  }
 0x206   :  { %347 = vsyncadd [#allocation5], 4294967280 }
 0x207   :  { %229 = vsyncpa [#allocation4], 1 }
 0x208   :  { %230 = vsyncpa [#allocation7], 1 }
 0x209   :  { %231 = vsyncpa [#allocation5], 1 }

</bundles_post_ra>
